<compile_context>
chip_gen: v7x
topology: tpu7x:2x2x1
jax: 0.10.0
libtpu: 0.0.40
codegen_flags: <defaults>
</compile_context>

<pallas_src>
from functools import partial

import jax
import jax.numpy as jnp
from jax.experimental import pallas as pl
from jax.experimental.pallas import tpu as pltpu

LANE = 128
PREFERRED_TILE_B = 1024


def _round_up(x, m):
    return ((x + m - 1) // m) * m


def _pick_tile_b(batch, preferred=PREFERRED_TILE_B):
    """Large tile to amortize per-step overhead; >=2 grid steps for big batches (v7x megacore)."""
    if batch <= 8:
        return 8
    half = _round_up((batch + 1) // 2, 8)  # sublane-aligned
    return max(8, min(preferred, half))


def _mlp_kernel(x_ref, w1_ref, w2_ref, w3_ref, b_ref, o_ref, *, h1p, h2p, pred):
    # Biases are rows of a single packed (3, PMAX) f32 array; slices are static.
    b1 = b_ref[0:1, :h1p]
    b2 = b_ref[1:2, :h2p]
    b3 = b_ref[2:3, :pred]

    x = x_ref[...]  # bf16 (TILE_B, seq)

    # fc1 + ReLU : (TILE_B, seq) @ (seq, h1p) -> f32 (TILE_B, h1p)
    h1 = jnp.dot(x, w1_ref[...], preferred_element_type=jnp.float32)
    h1 = jnp.maximum(h1 + b1, 0.0).astype(jnp.bfloat16)

    # fc2 + ReLU : (TILE_B, h1p) @ (h1p, h2p) -> f32 (TILE_B, h2p)
    h2 = jnp.dot(h1, w2_ref[...], preferred_element_type=jnp.float32)
    h2 = jnp.maximum(h2 + b2, 0.0).astype(jnp.bfloat16)

    # fc3 (no activation) : (TILE_B, h2p) @ (h2p, pred) -> f32 (TILE_B, pred)
    o = jnp.dot(h2, w3_ref[...], preferred_element_type=jnp.float32) + b3
    o_ref[...] = o.astype(o_ref.dtype)


def pack_params(params):
    """One-time packing: bf16 weights zero-padded to 128-lane hidden widths; biases stacked (f32)."""
    w1, b1, w2, b2, w3, b3 = params
    seq, h1 = w1.shape
    h2 = w2.shape[1]
    pred = w3.shape[1]

    h1p = _round_up(h1, LANE)
    h2p = _round_up(h2, LANE)
    pmax = max(h1p, h2p, _round_up(pred, LANE))

    w1p = jnp.pad(w1, ((0, 0), (0, h1p - h1))).astype(jnp.bfloat16)
    w2p = jnp.pad(w2, ((0, h1p - h1), (0, h2p - h2))).astype(jnp.bfloat16)
    # w3 keeps its real pred columns (output is stored un-padded); only rows padded.
    w3p = jnp.pad(w3, ((0, h2p - h2), (0, 0))).astype(jnp.bfloat16)

    bias = jnp.zeros((3, pmax), jnp.float32)
    bias = bias.at[0, :h1].set(b1.reshape(-1).astype(jnp.float32))
    bias = bias.at[1, :h2].set(b2.reshape(-1).astype(jnp.float32))
    bias = bias.at[2, :pred].set(b3.reshape(-1).astype(jnp.float32))

    dims = dict(seq=seq, h1p=h1p, h2p=h2p, pmax=pmax, pred=pred)
    return (w1p, w2p, w3p, bias), dims


def mlp_forward(x, dec_inp, packed, dims):
    """Replicates Model.forward. x: (B, seq_len, C). dec_inp is unused (as in torch)."""
    del dec_inp  # unused by the PyTorch module as well
    w1p, w2p, w3p, bias = packed
    seq, h1p, h2p = dims["seq"], dims["h1p"], dims["h2p"]
    pmax, pred = dims["pmax"], dims["pred"]

    batch = x.shape[0]
    x2d = x.reshape(batch, -1).astype(jnp.bfloat16)  # (B, seq_len * C) == (B, input_size)

    tile_b = _pick_tile_b(batch)
    grid = (pl.cdiv(batch, tile_b),)  # ragged last block: OOB rows computed but never stored

    out = pl.pallas_call(
        partial(_mlp_kernel, h1p=h1p, h2p=h2p, pred=pred),
        out_shape=jax.ShapeDtypeStruct((batch, pred), jnp.float32),
        grid=grid,
        in_specs=[
            # Activations: one tile_b slab per grid step.
            pl.BlockSpec((tile_b, seq), lambda i: (i, 0)),
            # Weights / packed bias: constant index_map -> stay VMEM-resident.
            pl.BlockSpec((seq, h1p), lambda i: (0, 0)),
            pl.BlockSpec((h1p, h2p), lambda i: (0, 0)),
            pl.BlockSpec((h2p, pred), lambda i: (0, 0)),
            pl.BlockSpec((3, pmax), lambda i: (0, 0)),
        ],
        # Un-padded output tile: last dim == full array dim (legal even though < 128).
        out_specs=pl.BlockSpec((tile_b, pred), lambda i: (i, 0)),
        compiler_params=pltpu.CompilerParams(
            dimension_semantics=("parallel",),
        ),
    )(x2d, w1p, w2p, w3p, bias)

    # x.reshape(x.size(0), self.output_size, -1)
    return out.reshape(batch, pred, -1)


def init_params(key, input_size, hidden1, hidden2, output_size, dtype=jnp.float32):
    """Deterministic param init (uniform, roughly like torch.nn.Linear defaults)."""
    ks = jax.random.split(key, 6)

    def lin(kw, kb, fan_in, fan_out):
        bound = 1.0 / jnp.sqrt(float(fan_in))
        w = jax.random.uniform(kw, (fan_in, fan_out), dtype, -bound, bound)
        b = jax.random.uniform(kb, (1, fan_out), dtype, -bound, bound)
        return w, b

    w1, b1 = lin(ks[0], ks[1], input_size, hidden1)
    w2, b2 = lin(ks[2], ks[3], hidden1, hidden2)
    w3, b3 = lin(ks[4], ks[5], hidden2, output_size)
    return (w1, b1, w2, b2, w3, b3)


def _reference(x, params):
    w1, b1, w2, b2, w3, b3 = params
    B = x.shape[0]
    h = x.reshape(B, -1)
    h = jnp.maximum(h @ w1 + b1, 0.0)
    h = jnp.maximum(h @ w2 + b2, 0.0)
    return (h @ w3 + b3).reshape(B, w3.shape[1], -1)


if __name__ == "__main__":
    # args: seq_len=8, pred_len=4, hidden_dim=32  (hidden_size_2 fixed at 128)
    B, seq_len, pred_len, hidden_dim, hidden2, C = 2, 8, 4, 32, 128, 1

    key = jax.random.PRNGKey(0)
    k_x, k_dec, k_p, k_big = jax.random.split(key, 4)

    x = jax.random.normal(k_x, (B, seq_len, C), jnp.float32)
    dec_inp = jax.random.normal(k_dec, (B, pred_len, C), jnp.float32)  # unused, as in torch
    params = init_params(k_p, seq_len * C, hidden_dim, hidden2, pred_len)
    packed, dims = pack_params(params)

    out = mlp_forward(x, dec_inp, packed, dims)
    out = jax.block_until_ready(out)

    ref = _reference(x, params)
    assert out.shape == (B, pred_len, 1), out.shape
    # bf16 matmul operands with f32 accumulation -> loosened tolerances vs f32 reference.
    assert jnp.allclose(out, ref, atol=5e-2, rtol=5e-2), "mismatch vs JAX reference (B=2)"

    # Also exercise the multi-step grid + ragged-last-block path with a larger batch.
    B_big = 300  # tile_b=152 -> 2 grid steps; last block has 4 masked (never-stored) rows
    x_big = jax.random.normal(k_big, (B_big, seq_len, C), jnp.float32)
    out_big = jax.block_until_ready(mlp_forward(x_big, None, packed, dims))
    ref_big = _reference(x_big, params)
    assert out_big.shape == (B_big, pred_len, 1), out_big.shape
    assert jnp.allclose(out_big, ref_big, atol=5e-2, rtol=5e-2), "mismatch vs JAX reference (B=300)"
    assert jnp.all(jnp.isfinite(out_big)), "non-finite values in output"

    print("KERNEL_OK")
</pallas_src>

<mosaic_0001>
module attributes {stable_mosaic.version = 11 : i64} {
  func.func @_mlp_kernel(%arg0: i32, %arg1: memref<8x8xbf16, #tpu.memory_space<vmem>>, %arg2: memref<8x128xbf16, #tpu.memory_space<vmem>>, %arg3: memref<128x128xbf16, #tpu.memory_space<vmem>>, %arg4: memref<128x4xbf16, #tpu.memory_space<vmem>>, %arg5: memref<3x128xf32, #tpu.memory_space<vmem>>, %arg6: memref<8x4xf32, #tpu.memory_space<vmem>>) attributes {dimension_semantics = [#tpu.dimension_semantics<parallel>], iteration_bounds = array<i64: 1>, scalar_prefetch = 0 : i64, scratch_operands = 0 : i64, tpu.core_type = #tpu.core_type<tc>, window_params = [{transform_indices = @transform_0, window_bounds = array<i64: 8, 8>}, {pipeline_mode = #tpu.pipeline_mode<synchronous>, transform_indices = @transform_1, window_bounds = array<i64: 8, 128>}, {pipeline_mode = #tpu.pipeline_mode<synchronous>, transform_indices = @transform_2, window_bounds = array<i64: 128, 128>}, {pipeline_mode = #tpu.pipeline_mode<synchronous>, transform_indices = @transform_3, window_bounds = array<i64: 128, 4>}, {pipeline_mode = #tpu.pipeline_mode<synchronous>, transform_indices = @transform_4, window_bounds = array<i64: 3, 128>}, {transform_indices = @transform_5, window_bounds = array<i64: 8, 4>}]} {
    %c0 = arith.constant 0 : index
    %c0_0 = arith.constant 0 : index
    %0 = vector.load %arg5[%c0, %c0_0] : memref<3x128xf32, #tpu.memory_space<vmem>>, vector<1x128xf32>
    %c1 = arith.constant 1 : index
    %c0_1 = arith.constant 0 : index
    %1 = vector.load %arg5[%c1, %c0_1] : memref<3x128xf32, #tpu.memory_space<vmem>>, vector<1x128xf32>
    %c2 = arith.constant 2 : index
    %c0_2 = arith.constant 0 : index
    %2 = vector.load %arg5[%c2, %c0_2] : memref<3x128xf32, #tpu.memory_space<vmem>>, vector<1x4xf32>
    %c0_3 = arith.constant 0 : index
    %c0_4 = arith.constant 0 : index
    %3 = vector.load %arg1[%c0_3, %c0_4] : memref<8x8xbf16, #tpu.memory_space<vmem>>, vector<8x8xbf16>
    %c0_5 = arith.constant 0 : index
    %c0_6 = arith.constant 0 : index
    %4 = vector.load %arg2[%c0_5, %c0_6] : memref<8x128xbf16, #tpu.memory_space<vmem>>, vector<8x128xbf16>
    %cst = arith.constant dense<0.000000e+00> : vector<8x128xf32>
    %5 = tpu.matmul %3, %4, %cst {dimension_numbers = #tpu.dot_dimension_numbers<[1], [0], [0], [1], [0, 0, 1, 1], [], []>} : vector<8x8xbf16>, vector<8x128xbf16>, vector<8x128xf32> -> vector<8x128xf32>
    %6 = vector.broadcast %0 : vector<1x128xf32> to vector<8x128xf32>
    %7 = arith.addf %5, %6 : vector<8x128xf32>
    %cst_7 = arith.constant 0.000000e+00 : f32
    %8 = vector.broadcast %cst_7 : f32 to vector<8x128xf32>
    %9 = arith.maximumf %7, %8 : vector<8x128xf32>
    %10 = arith.truncf %9 : vector<8x128xf32> to vector<8x128xbf16>
    %c0_8 = arith.constant 0 : index
    %c0_9 = arith.constant 0 : index
    %11 = vector.load %arg3[%c0_8, %c0_9] : memref<128x128xbf16, #tpu.memory_space<vmem>>, vector<128x128xbf16>
    %cst_10 = arith.constant dense<0.000000e+00> : vector<8x128xf32>
    %12 = tpu.matmul %10, %11, %cst_10 {dimension_numbers = #tpu.dot_dimension_numbers<[1], [0], [0], [1], [0, 0, 1, 1], [], []>} : vector<8x128xbf16>, vector<128x128xbf16>, vector<8x128xf32> -> vector<8x128xf32>
    %13 = vector.broadcast %1 : vector<1x128xf32> to vector<8x128xf32>
    %14 = arith.addf %12, %13 : vector<8x128xf32>
    %cst_11 = arith.constant 0.000000e+00 : f32
    %15 = vector.broadcast %cst_11 : f32 to vector<8x128xf32>
    %16 = arith.maximumf %14, %15 : vector<8x128xf32>
    %17 = arith.truncf %16 : vector<8x128xf32> to vector<8x128xbf16>
    %c0_12 = arith.constant 0 : index
    %c0_13 = arith.constant 0 : index
    %18 = vector.load %arg4[%c0_12, %c0_13] : memref<128x4xbf16, #tpu.memory_space<vmem>>, vector<128x4xbf16>
    %cst_14 = arith.constant dense<0.000000e+00> : vector<8x4xf32>
    %19 = tpu.matmul %17, %18, %cst_14 {dimension_numbers = #tpu.dot_dimension_numbers<[1], [0], [0], [1], [0, 0, 1, 1], [], []>} : vector<8x128xbf16>, vector<128x4xbf16>, vector<8x4xf32> -> vector<8x4xf32>
    %20 = vector.broadcast %2 : vector<1x4xf32> to vector<8x4xf32>
    %21 = arith.addf %19, %20 : vector<8x4xf32>
    %c0_15 = arith.constant 0 : index
    %c0_16 = arith.constant 0 : index
    %22 = vector.load %arg6[%c0_15, %c0_16] : memref<8x4xf32, #tpu.memory_space<vmem>>, vector<8x4xf32>
    tpu.vector_store %arg6[%c0_15, %c0_16], %21 {strides = array<i32>} : memref<8x4xf32, #tpu.memory_space<vmem>>, vector<8x4xf32>,
    return
  }
  func.func @transform_0(%arg0: i32) -> (i32, i32) {
    %c0_i32 = arith.constant 0 : i32
    %c0_i32_0 = arith.constant 0 : i32
    return %arg0, %c0_i32 : i32, i32
  }
  func.func @transform_1(%arg0: i32) -> (i32, i32) {
    %c0_i32 = arith.constant 0 : i32
    %c0_i32_0 = arith.constant 0 : i32
    %c0_i32_1 = arith.constant 0 : i32
    return %c0_i32, %c0_i32_0 : i32, i32
  }
  func.func @transform_2(%arg0: i32) -> (i32, i32) {
    %c0_i32 = arith.constant 0 : i32
    %c0_i32_0 = arith.constant 0 : i32
    %c0_i32_1 = arith.constant 0 : i32
    return %c0_i32, %c0_i32_0 : i32, i32
  }
  func.func @transform_3(%arg0: i32) -> (i32, i32) {
    %c0_i32 = arith.constant 0 : i32
    %c0_i32_0 = arith.constant 0 : i32
    %c0_i32_1 = arith.constant 0 : i32
    return %c0_i32, %c0_i32_0 : i32, i32
  }
  func.func @transform_4(%arg0: i32) -> (i32, i32) {
    %c0_i32 = arith.constant 0 : i32
    %c0_i32_0 = arith.constant 0 : i32
    %c0_i32_1 = arith.constant 0 : i32
    return %c0_i32, %c0_i32_0 : i32, i32
  }
  func.func @transform_5(%arg0: i32) -> (i32, i32) {
    %c0_i32 = arith.constant 0 : i32
    %c0_i32_0 = arith.constant 0 : i32
    return %arg0, %c0_i32 : i32, i32
  }
}

</mosaic_0001>

<bundles_post_ra>
// kernel: tpu_custom_call.1
= control target key start
LH: loop header
LB: loop body
LE: loop exit
PB: predicated region body
PF: predicated region fallthrough
CT: control target
= control target key end

     0   :  { %10 = vsyncpa [#allocation3], 0  ;;  %vm66_vm0 = vcmask 1043456   ;;  %v43_v1 = vlaneseq  ;;  %v480_v2 = vmov 0.0   ;;  %vm481_vm1 = vmmov 0   ;;  %s623_s0 = inlined_call_operand.vmem [shape: bf16[2,8], index: 0, kind: input, shape index: {}]   ;;  %s624_s1 = inlined_call_operand.vmem [shape: bf16[8,128], index: 1, kind: input, shape index: {}]   ;;  %s625_s2 = inlined_call_operand.vmem [shape: bf16[128,128], index: 2, kind: input, shape index: {}]   ;;  %s626_s3 = inlined_call_operand.vmem [shape: bf16[128,4], index: 3, kind: input, shape index: {}]   ;;  %s627_s4 = inlined_call_operand.vmem [shape: f32[3,128], index: 4, kind: input, shape index: {}]   ;;  %s628_s5 = inlined_call_operand.hbm [shape: f32[2,4], index: 5, kind: output, shape index: {}]  }
   0x1   :  { %v29_v0 = vld [vmem:[%s624_s1] sm:$0xf]  ;;  %388 = vmatprep.subr.bf16.mxu0 %v480_v2  ;;  %394 = vmatprep.subr.bf16.mxu1 %v480_v2  ;;  %v482_v8 = vmov 1966171168   ;;  %v441_v15 = vld [vmem:[%s625_s2 + $0x8] sm:$0xff]   ;;  %vm62_vm2 = vcmask 64512  }
   0x2   :  { %v68_v3 = vsel %vm66_vm0, %v29_v0, 0  ;;  %v25_v4 = vld [vmem:[%s623_s0] sm:$0x1]  ;;  %v26_v5 = vld [vmem:[%s623_s0 + $0x1] sm:$0x1]  ;;  %390 = vmatprep.mubr.msk.bf16.mxu0 %vm481_vm1, %v480_v2  ;;  %v41_v9 = vunpack.c.l.s4 %v482_v8  ;;  %v44_v10 = vshrl.u32 %v43_v1, 7  ;;  %410 = vmatprep.mubr.msk.bf16.mxu1 %vm481_vm1, %v480_v2 }
   0x3   :  { %389 = vmatpush3.bf16.msra.mxu0 %v68_v3  ;;  %v27_v6 = vld [vmem:[%s623_s0 + $0x2] sm:$0x1]  ;;  %v28_v7 = vld [vmem:[%s623_s0 + $0x3] sm:$0x1]  ;;  %v38_v12 = vcombine.low %v25_v4, %v26_v5  ;;  %v442_v19 = vld [vmem:[%s625_s2 + $0x10] sm:$0xff]   ;;  %vm330_vm3 = vcmask 31744  }
   0x4   :  { %414 = vmatprep.subr.bf16.mxu0 %v480_v2  ;;  %v440_v11 = vld [vmem:[%s625_s2] sm:$0xff]   ;;  %v39_v13 = vcombine.low %v27_v6, %v28_v7  ;;  %v42_v14 = vunpack.c.0.s8 %v41_v9  ;;  %v443_v21 = vld [vmem:[%s625_s2 + $0x18] sm:$0xff]   ;;  %v445_v24 = vld [vmem:[%s625_s2 + $0x28] sm:$0xff]  }
   0x5   :  { %395 = vmatpush3.bf16.msra.mxu1 %v440_v11  ;;  %v444_v23 = vld [vmem:[%s625_s2 + $0x20] sm:$0xff]   ;;  %v446_v25 = vld [vmem:[%s625_s2 + $0x30] sm:$0xff]   ;;  %v447_v26 = vld [vmem:[%s625_s2 + $0x38] sm:$0xff]  }
   0x6   :  { %v45_v16 = vsub.s32 %v42_v14, %v44_v10  ;;  %396 = vmatprep.subr.bf16.mxu1 %v480_v2  ;;  %v448_v27 = vld [vmem:[%s626_s3] sm:$0xff]   ;;  %v449_v28 = vld [vmem:[%s626_s3 + $0x8] sm:$0xff]   ;;  %v450_v29 = vld [vmem:[%s626_s3 + $0x10] sm:$0xff]  }
   0x7   :  { %v451_v30 = vld [vmem:[%s626_s3 + $0x18] sm:$0xff]   ;;  %v452_v31 = vld [vmem:[%s626_s3 + $0x20] sm:$0xff]   ;;  %v453_v32 = vld [vmem:[%s626_s3 + $0x28] sm:$0xff]  }
   0x8   :  { %v46_v17 = vrot.slane %v38_v12, %v45_v16  ;;  %v53_v18 = vrot.slane %v39_v13, %v45_v16  ;;  %v348_v33 = vld [vmem:[%s627_s4] ss:$0 sm:$0xff]  ;;  %v454_v41 = vld [vmem:[%s626_s3 + $0x30] sm:$0xff]   ;;  %v455_v42 = vld [vmem:[%s626_s3 + $0x38] sm:$0xff]  }
   0x9   :  { %397 = vmatpush3.bf16.msra.mxu1 %v441_v15  ;;  %v350_v43 = vld [vmem:[%s627_s4 + $0x1] ss:$0 sm:$0xff]  ;;  %v359_v51 = vld [vmem:[%s627_s4 + $0x2] ss:$0 sm:$0xff] }
   0xa   :  { %v54_v20 = vcombine.low %v46_v17, %v53_v18  ;;  %398 = vmatprep.subr.bf16.mxu1 %v480_v2 }
   0xc   :  { %v61_v22 = vrot.slane %v54_v20, %v45_v16 }
   0xd   :  { %399 = vmatpush3.bf16.msra.mxu1 %v442_v19 }
   0xe   :  { %391 = vmatmul.mubr.msk.bf16.vlgmr.msra.gmra.mrb[0].mxu0 %vm62_vm2, %v61_v22  ;;  %400 = vmatprep.subr.bf16.mxu1 %v480_v2 }
   0xf   :  { %430 = vmatprep.mubr.msk.bf16.mxu0 %vm481_vm1, %v480_v2  ;;  %415 = vmatpush3.bf16.msra.mxu0 %v448_v27 }
  0x10   :  { %416 = vmatprep.subr.bf16.mxu0 %v480_v2 }
  0x11   :  { %401 = vmatpush3.bf16.msra.mxu1 %v443_v21 }
  0x12   :  { %402 = vmatprep.subr.bf16.mxu1 %v480_v2 }
  0x13   :  { %417 = vmatpush3.bf16.msra.mxu0 %v449_v28 }
  0x14   :  { %418 = vmatprep.subr.bf16.mxu0 %v480_v2 }
  0x15   :  { %403 = vmatpush3.bf16.msra.mxu1 %v444_v23 }
  0x16   :  { %404 = vmatprep.subr.bf16.mxu1 %v480_v2 }
  0x17   :  { %419 = vmatpush3.bf16.msra.mxu0 %v450_v29 }
  0x18   :  { %420 = vmatprep.subr.bf16.mxu0 %v480_v2 }
  0x19   :  { %405 = vmatpush3.bf16.msra.mxu1 %v445_v24 }
  0x1a   :  { %406 = vmatprep.subr.bf16.mxu1 %v480_v2 }
  0x1b   :  { %421 = vmatpush3.bf16.msra.mxu0 %v451_v30 }
  0x1c   :  { %422 = vmatprep.subr.bf16.mxu0 %v480_v2 }
  0x1d   :  { %407 = vmatpush3.bf16.msra.mxu1 %v446_v25 }
  0x1e   :  { %408 = vmatprep.subr.bf16.mxu1 %v480_v2 }
  0x1f   :  { %423 = vmatpush3.bf16.msra.mxu0 %v452_v31 }
  0x20   :  { %424 = vmatprep.subr.bf16.mxu0 %v480_v2 }
  0x21   :  { %409 = vmatpush3.bf16.msra.mxu1 %v447_v26 }
  0x23   :  { %425 = vmatpush3.bf16.msra.mxu0 %v453_v32 }
  0x24   :  { %426 = vmatprep.subr.bf16.mxu0 %v480_v2 }
  0x27   :  { %427 = vmatpush3.bf16.msra.mxu0 %v454_v41 }
  0x28   :  { %428 = vmatprep.subr.bf16.mxu0 %v480_v2 }
  0x2b   :  { %429 = vmatpush3.bf16.msra.mxu0 %v455_v42 }
  0xe1   :  { %v104_v34 = vpop.f32.mrb[0].mxu0 }
  0xe2   :  { %v105_v35 = vadd.f32 %v348_v33, %v104_v34  ;;  %v392_v36 = vpop.f32.mrb[1].mxu0 }
  0xe3   :  { %v107_v37 = vpop.f32.mrb[2].mxu0 }
  0xe4   :  { %v110_v38 = vmax.f32 %v105_v35, 0.0  ;;  %v393_v39 = vpop.f32.mrb[3].mxu0 }
  0xe6   :  { %v111_v40 = vpack.c.bf16 %v110_v38, %v110_v38 }
  0xe8   :  { %411 = vmatmul.mubr.bf16.vlgmr.msra.gmra.mrb[0].mxu1 %v111_v40 }
 0x1bb   :  { %v214_v44 = vpop.f32.mrb[0].mxu1 }
 0x1bc   :  { %v215_v45 = vadd.f32 %v350_v43, %v214_v44  ;;  %v412_v46 = vpop.f32.mrb[1].mxu1 }
 0x1bd   :  { %v217_v47 = vpop.f32.mrb[2].mxu1 }
 0x1be   :  { %v220_v48 = vmax.f32 %v215_v45, 0.0  ;;  %v413_v49 = vpop.f32.mrb[3].mxu1 }
 0x1c0   :  { %v221_v50 = vpack.c.bf16 %v220_v48, %v220_v48 }
 0x1c2   :  { %431 = vmatmul.mubr.bf16.vlgmr.msra.gmra.mrb[4].mxu0 %v221_v50 }
 0x295   :  { %v324_v52 = vpop.f32.mrb[4].mxu0 }
 0x296   :  { %v325_v53 = vadd.f32 %v359_v51, %v324_v52  ;;  %v432_v54 = vpop.f32.mrb[5].mxu0 }
 0x297   :  { %v327_v55 = vpop.f32.mrb[6].mxu0 }
 0x298   :  { %331 = vst.msk [vmem:[#allocation2] sm:$0xff] %vm330_vm3, %v325_v53  ;;  %v433_v56 = vpop.f32.mrb[7].mxu0 }
 0x299   :  { %336 = vsyncadd [#allocation3], 96  ;;  %s483_s3 = smov [#allocation2]  }
 0x29a   :  { %s337_s11 = sshll.u32 %s483_s3, 4  ;;  %s338_s11 = int_to_ptr.vmem [resolvable:$true] %s337_s11 }
 0x29b   :  { %s456_s12 = scalar_lea.vmem %s338_s11, 32  ;;  %s460_s13 = scalar_lea.vmem %s338_s11, 128 }
 0x29c   :  { %p457_p0 = scmp.ne.s32.totalorder %s338_s11, %s456_s12  ;;  %p461_p1 = scmp.lt.s32.totalorder %s338_s11, %s338_s11 }
 0x29d   :  { %p462_p2 = scmp.lt.s32.totalorder %s460_s13, %s456_s12 }
 0x29f   :  { %p463_p3 = por %p462_p2, %p461_p1 }
 0x2a1   :  { %p464_p4 = pnand %p463_p3, %p457_p0 }
 0x2a3   :  { %467 = shalt.err (!%p464_p4)
}
 0x2a4   :  { %s468_s15 = scalar_lea.hbm %s628_s5, 32 }
 0x2a5   :  { %p469_p5 = scmp.ne.s32.totalorder %s628_s5, %s468_s15  ;;  %p472_p6 = scmp.lt.u32.totalorder %s468_s15, %s628_s5 }
 0x2a7   :  { %p474_p7 = pnand %p472_p6, %p469_p5 }
 0x2a9   :  { %477 = shalt.err (!%p474_p7)
}
 0x2aa   :  { %s484_s20 = smov 32   ;;  %s485_s21 = smov 2  }
 0x2ab   :  { %343 = dma.vmem_to_hbm [thread:$0]  %s338_s11, 32, %s628_s5, [#allocation3], %s484_s20, %s484_s20, %s485_s21  }
 0x2ac   :  { %478 = dma.done.wait [#allocation3], 128  }
 0x2ad   :  { %479 = vsyncadd [#allocation3], 4294967168 }
 0x2ae   :  { %347 = vsyncpa [#allocation3], 1 }

</bundles_post_ra>
